<compile_context>
chip_gen: v5e
topology: v5e:2x2
jax: 0.10.0
libtpu: 0.0.40
codegen_flags: <defaults>
</compile_context>

<pallas_src>
import functools

import jax
import jax.numpy as jnp
from jax.experimental import pallas as pl
from jax.experimental.pallas import tpu as pltpu

LANES = 128


def _round_up(x, m):
    return ((x + m - 1) // m) * m


# ----------------------------------------------------------------------------
# Fused kernel (one row-block of the batch).
#   per view v:
#     info = sigmoid(x @ Wi + bi)                    (FeatureInforEncoder)
#     head = (x * info) @ Wfused + bfused            (FeatureEncoder folded
#                                                      into Classifier|Conf)
#     sm   = softmax(head[:, :C]); mcc = sigmoid(head[:, C])
#     P   += sm * mcc ; delta += (p_last - p_last^2) * 2 * mcc
#   fusion (per row):
#     Predictions = 1 + P, last col += delta
#     MMlogit = softmax(Predictions[:, :-1])
#     unc     = Predictions[:, -1] / max(Predictions)
#     ce      = CE(Predictions[:, :-1], label)       (reduction='none')
#   Output slab lanes: [MMlogit (C-1) | unc | ce | sum_v sum_d info | 0...]
#   The scalar MMLoss means are taken in the wrapper.
# ----------------------------------------------------------------------------
def html_fused_kernel(x_ref, wi_ref, wh_ref, b_ref, label_ref, out_ref, *,
                      classes):
    V, BN, D = x_ref.shape
    W = wh_ref.shape[2]               # lane-padded head / output width (128k)
    C = classes                       # num_class + 1

    col = jax.lax.broadcasted_iota(jnp.int32, (BN, W), 1)
    in_pred = col < C                 # per-view class-logit lanes

    # Predictions = ones(BN, C), kept lane-padded to W (lanes >= C stay 0).
    P = jnp.where(in_pred, jnp.float32(1.0), jnp.float32(0.0))
    last_delta = jnp.zeros((BN, 1), jnp.float32)
    info_rowsum = jnp.zeros((BN, 1), jnp.float32)

    for v in range(V):                # V is small & static -> unrolled
        x = x_ref[v]                  # (BN, D) f32
        b = b_ref[v]                  # (2, BW) packed f32 biases
        bi = b[0:1, :D]
        bh = b[1:2, :W]

        # FeatureInforEncoder + sigmoid (dropout = identity in eval mode).
        info = jax.nn.sigmoid(
            jnp.dot(x.astype(jnp.bfloat16), wi_ref[v],
                    preferred_element_type=jnp.float32) + bi)
        # Gated features through the pre-folded (FeatureEncoder @ [clf|conf])
        # head: one bf16 MXU push per view.
        head = jnp.dot((x * info).astype(jnp.bfloat16), wh_ref[v],
                       preferred_element_type=jnp.float32) + bh     # (BN, W)
        mcc = jax.nn.sigmoid(head[:, C:C + 1])                      # (BN, 1)

        # exact softmax over the C class lanes (feeds returned probs / loss)
        z = jnp.where(in_pred, head, -jnp.inf)
        m = jnp.max(z, axis=1, keepdims=True)
        e = jnp.exp(z - m)
        sm = e * (1.0 / jnp.sum(e, axis=1, keepdims=True))

        p_last = sm[:, C - 1:C]                                     # (BN, 1)
        P = P + sm * mcc
        last_delta = last_delta + (p_last - p_last * p_last) * 2.0 * mcc
        info_rowsum = info_rowsum + jnp.sum(info, axis=1, keepdims=True)

    # ---------------- fusion (per-row results only) ----------------
    in_logit = col < C - 1                           # Predictions[:, :-1]
    zl = jnp.where(in_logit, P, -jnp.inf)
    mx = jnp.max(zl, axis=1, keepdims=True)
    e = jnp.exp(zl - mx)
    se = jnp.sum(e, axis=1, keepdims=True)
    mmlogit = e * (1.0 / se)                         # exact; lanes >= C-1 are 0

    last_val = P[:, C - 1:C] + last_delta            # Predictions[:, -1]
    max_p = jnp.maximum(mx, last_val)                # row max over all C cols
    unc = last_val * pl.reciprocal(max_p, approx=True)   # approx OK here only

    # cross-entropy(Predictions[:, :-1], label), reduction='none'
    logp = P - (mx + jnp.log(se))                    # log-softmax, lanes < C-1
    onehot = (col == label_ref[...]).astype(jnp.float32)  # labels < C-1
    ce = -jnp.sum(onehot * logp, axis=1, keepdims=True)   # (BN, 1)

    # lane-dense packed slab: [MMlogit | unc | ce | info_rowsum | zeros]
    out = mmlogit
    out = out + jnp.where(col == C - 1, unc, jnp.float32(0.0))
    out = out + jnp.where(col == C, ce, jnp.float32(0.0))
    out = out + jnp.where(col == C + 1, info_rowsum, jnp.float32(0.0))
    out_ref[...] = out


def run_html_fused(xs, wi, wh, b, label2d, classes, *, block_n):
    V, Np, D = xs.shape
    W = wh.shape[2]
    BW = b.shape[2]
    assert Np % block_n == 0
    grid = (Np // block_n,)
    kernel = functools.partial(html_fused_kernel, classes=classes)
    return pl.pallas_call(
        kernel,
        out_shape=jax.ShapeDtypeStruct((Np, W), jnp.float32),
        grid=grid,
        in_specs=[
            pl.BlockSpec((V, block_n, D), lambda i: (0, i, 0)),   # x rows
            pl.BlockSpec((V, D, D), lambda i: (0, 0, 0)),         # Wi (bf16)
            pl.BlockSpec((V, D, W), lambda i: (0, 0, 0)),         # Wfused (bf16)
            pl.BlockSpec((V, 2, BW), lambda i: (0, 0, 0)),        # packed biases
            pl.BlockSpec((block_n, 1), lambda i: (i, 0)),         # labels
        ],
        out_specs=pl.BlockSpec((block_n, W), lambda i: (i, 0)),
        # Row blocks are independent -> megacore-shard on v7x; harmless on
        # v5e/v6e.  (vmem_limit_bytes only needed if D/hidden grow large.)
        compiler_params=pltpu.CompilerParams(
            dimension_semantics=("parallel",)),
    )(xs, wi, wh, b, label2d)


# ----------------------------------------------------------------------------
# Parameter setup (deterministic xavier-normal weights, zero biases),
# packed + pre-folded for the fused kernel.
# ----------------------------------------------------------------------------
def xavier_normal(key, fan_in, fan_out):
    std = (2.0 / (fan_in + fan_out)) ** 0.5
    return jax.random.normal(key, (fan_in, fan_out), jnp.float32) * std


def init_params(key, in_dims, hidden, classes):
    # TODO(synk): ragged per-view in_dims would need per-view feature padding
    # plus a masked info-sum; the fused kernel assumes one shared in_dim.
    assert all(d == in_dims[0] for d in in_dims)
    V = len(in_dims)
    D = in_dims[0]
    W = _round_up(classes + 2, LANES)          # head/out lane width
    BW = _round_up(max(D, W), LANES)           # packed-bias lane width

    wi, wh = [], []
    for _ in range(V):
        key, k1, k2, k3, k4 = jax.random.split(key, 5)
        w_infor = xavier_normal(k1, D, D)              # FeatureInforEncoder
        w_enc = xavier_normal(k2, D, hidden)           # FeatureEncoder
        w_clf = xavier_normal(k3, hidden, classes)     # ModalityClassifier
        w_conf = xavier_normal(k4, hidden, 1)          # ModalityConfidence
        head = jnp.zeros((hidden, W), jnp.float32)
        head = head.at[:, :classes].set(w_clf)
        head = head.at[:, classes:classes + 1].set(w_conf)
        # Fold FeatureEncoder into the head in f32, store bf16 for the MXU.
        wh.append((w_enc @ head).astype(jnp.bfloat16))
        wi.append(w_infor.astype(jnp.bfloat16))

    # packed biases: row 0 = FeatureInforEncoder, row 1 = fused head bias
    # (= be @ head + [bclf|bconf]); xavier_init zeroes every bias.
    b = jnp.zeros((V, 2, BW), jnp.float32)
    return dict(wi=jnp.stack(wi), wh=jnp.stack(wh), b=b)


@functools.partial(jax.jit, static_argnames=("num_class",))
def html_forward(data_list, params, label, *, num_class):
    """Returns (MMLoss, MMlogit, uncertainty) — matches HTMLModel.forward."""
    classes = num_class + 1
    xs = jnp.stack([jnp.squeeze(d, axis=0) for d in data_list])  # (V, N, D)
    V, N, D = xs.shape

    block_n = min(256, _round_up(N, 8))        # row block (VMEM-bounded)
    n_pad = _round_up(N, block_n)
    label2d = label.astype(jnp.int32)[:, None]                   # (N, 1)
    if n_pad != N:
        xs = jnp.pad(xs, ((0, 0), (0, n_pad - N), (0, 0)))
        label2d = jnp.pad(label2d, ((0, n_pad - N), (0, 0)))

    slab = run_html_fused(xs, params["wi"], params["wh"], params["b"],
                          label2d, classes, block_n=block_n)

    mmlogit = slab[:N, :classes - 1]
    uncertainty = slab[:N, classes - 1]
    ce = slab[:N, classes]
    info_rowsum = slab[:N, classes + 1]
    # MMLoss = sum_v mean(info_v) + mean(CE) + mean(uncertainty)
    loss = (jnp.sum(info_rowsum) / jnp.float32(N * D)
            + jnp.mean(ce) + jnp.mean(uncertainty))
    return loss, mmlogit, uncertainty


if __name__ == "__main__":
    # Small shapes: 2 views, in_dim=[32,32], hidden_dim=[32], num_class=7
    views = 2
    in_dims = [32, 32]
    hidden = 32
    num_class = 7
    classes = num_class + 1
    N = 8  # batch

    key = jax.random.PRNGKey(0)
    key, kp, kx0, kx1, kl = jax.random.split(key, 5)
    params = init_params(kp, in_dims, hidden, classes)

    # data_list[view] has a leading singleton dim that forward() squeezes off
    data_list = [
        jax.random.normal(kx0, (1, N, in_dims[0]), jnp.float32),
        jax.random.normal(kx1, (1, N, in_dims[1]), jnp.float32),
    ]
    label = jax.random.randint(kl, (N,), 0, num_class, jnp.int32)

    mmloss, mmlogit, uncertainty = html_forward(data_list, params, label,
                                                num_class=num_class)
    jax.block_until_ready((mmloss, mmlogit, uncertainty))

    assert mmlogit.shape == (N, num_class)
    assert uncertainty.shape == (N,)
    assert mmloss.shape == ()
    assert bool(jnp.isfinite(mmloss))
    print("KERNEL_OK")
</pallas_src>

<mosaic_0001>
module attributes {stable_mosaic.version = 11 : i64} {
  func.func @html_fused_kernel(%arg0: i32, %arg1: memref<2x8x32xf32, #tpu.memory_space<vmem>>, %arg2: memref<2x32x32xbf16, #tpu.memory_space<vmem>>, %arg3: memref<2x32x128xbf16, #tpu.memory_space<vmem>>, %arg4: memref<2x2x128xf32, #tpu.memory_space<vmem>>, %arg5: memref<8x1xi32, #tpu.memory_space<vmem>>, %arg6: memref<8x128xf32, #tpu.memory_space<vmem>>) attributes {dimension_semantics = [#tpu.dimension_semantics<parallel>], iteration_bounds = array<i64: 1>, scalar_prefetch = 0 : i64, scratch_operands = 0 : i64, tpu.core_type = #tpu.core_type<tc>, window_params = [{transform_indices = @transform_0, window_bounds = array<i64: 2, 8, 32>}, {pipeline_mode = #tpu.pipeline_mode<synchronous>, transform_indices = @transform_1, window_bounds = array<i64: 2, 32, 32>}, {pipeline_mode = #tpu.pipeline_mode<synchronous>, transform_indices = @transform_2, window_bounds = array<i64: 2, 32, 128>}, {pipeline_mode = #tpu.pipeline_mode<synchronous>, transform_indices = @transform_3, window_bounds = array<i64: 2, 2, 128>}, {transform_indices = @transform_4, window_bounds = array<i64: 8, 1>}, {transform_indices = @transform_5, window_bounds = array<i64: 8, 128>}]} {
    %0 = tpu.iota {dimensions = array<i32: 1>} : vector<8x128xi32>
    %c8_i32 = arith.constant 8 : i32
    %1 = vector.broadcast %c8_i32 : i32 to vector<8x128xi32>
    %2 = arith.cmpi slt, %0, %1 : vector<8x128xi32>
    %cst = arith.constant 1.000000e+00 : f32
    %cst_0 = arith.constant 0.000000e+00 : f32
    %3 = vector.broadcast %cst : f32 to vector<8x128xf32>
    %4 = vector.broadcast %cst_0 : f32 to vector<8x128xf32>
    %5 = arith.select %2, %3, %4 : vector<8x128xi1>, vector<8x128xf32>
    %cst_1 = arith.constant 0.000000e+00 : f32
    %6 = vector.broadcast %cst_1 : f32 to vector<8x1xf32>
    %cst_2 = arith.constant 0.000000e+00 : f32
    %7 = vector.broadcast %cst_2 : f32 to vector<8x1xf32>
    %c0 = arith.constant 0 : index
    %c0_3 = arith.constant 0 : index
    %c0_4 = arith.constant 0 : index
    %8 = vector.load %arg1[%c0, %c0_3, %c0_4] : memref<2x8x32xf32, #tpu.memory_space<vmem>>, vector<1x8x32xf32>
    %9 = vector.shape_cast %8 : vector<1x8x32xf32> to vector<8x32xf32>
    %c0_5 = arith.constant 0 : index
    %c0_6 = arith.constant 0 : index
    %c0_7 = arith.constant 0 : index
    %10 = vector.load %arg4[%c0_5, %c0_6, %c0_7] : memref<2x2x128xf32, #tpu.memory_space<vmem>>, vector<1x2x128xf32>
    %11 = vector.shape_cast %10 : vector<1x2x128xf32> to vector<2x128xf32>
    %12 = vector.extract_strided_slice %11 {offsets = [0, 0], sizes = [1, 32], strides = [1, 1]} : vector<2x128xf32> to vector<1x32xf32>
    %13 = vector.extract_strided_slice %11 {offsets = [1, 0], sizes = [1, 128], strides = [1, 1]} : vector<2x128xf32> to vector<1x128xf32>
    %14 = arith.truncf %9 : vector<8x32xf32> to vector<8x32xbf16>
    %c0_8 = arith.constant 0 : index
    %c0_9 = arith.constant 0 : index
    %c0_10 = arith.constant 0 : index
    %15 = vector.load %arg2[%c0_8, %c0_9, %c0_10] : memref<2x32x32xbf16, #tpu.memory_space<vmem>>, vector<1x32x32xbf16>
    %16 = vector.shape_cast %15 : vector<1x32x32xbf16> to vector<32x32xbf16>
    %cst_11 = arith.constant dense<0.000000e+00> : vector<8x32xf32>
    %17 = tpu.matmul %14, %16, %cst_11 {dimension_numbers = #tpu.dot_dimension_numbers<[1], [0], [0], [1], [0, 0, 1, 1], [], []>} : vector<8x32xbf16>, vector<32x32xbf16>, vector<8x32xf32> -> vector<8x32xf32>
    %18 = vector.broadcast %12 : vector<1x32xf32> to vector<8x32xf32>
    %19 = arith.addf %17, %18 : vector<8x32xf32>
    %20 = arith.negf %19 : vector<8x32xf32>
    %21 = math.exp %20 : vector<8x32xf32>
    %cst_12 = arith.constant 1.000000e+00 : f32
    %22 = vector.broadcast %cst_12 : f32 to vector<8x32xf32>
    %23 = arith.addf %22, %21 : vector<8x32xf32>
    %24 = arith.divf %22, %23 : vector<8x32xf32>
    %25 = arith.mulf %9, %24 : vector<8x32xf32>
    %26 = arith.truncf %25 : vector<8x32xf32> to vector<8x32xbf16>
    %c0_13 = arith.constant 0 : index
    %c0_14 = arith.constant 0 : index
    %c0_15 = arith.constant 0 : index
    %27 = vector.load %arg3[%c0_13, %c0_14, %c0_15] : memref<2x32x128xbf16, #tpu.memory_space<vmem>>, vector<1x32x128xbf16>
    %28 = vector.shape_cast %27 : vector<1x32x128xbf16> to vector<32x128xbf16>
    %cst_16 = arith.constant dense<0.000000e+00> : vector<8x128xf32>
    %29 = tpu.matmul %26, %28, %cst_16 {dimension_numbers = #tpu.dot_dimension_numbers<[1], [0], [0], [1], [0, 0, 1, 1], [], []>} : vector<8x32xbf16>, vector<32x128xbf16>, vector<8x128xf32> -> vector<8x128xf32>
    %30 = vector.broadcast %13 : vector<1x128xf32> to vector<8x128xf32>
    %31 = arith.addf %29, %30 : vector<8x128xf32>
    %32 = vector.extract_strided_slice %31 {offsets = [0, 8], sizes = [8, 1], strides = [1, 1]} : vector<8x128xf32> to vector<8x1xf32>
    %33 = arith.negf %32 : vector<8x1xf32>
    %34 = math.exp %33 : vector<8x1xf32>
    %cst_17 = arith.constant 1.000000e+00 : f32
    %35 = vector.broadcast %cst_17 : f32 to vector<8x1xf32>
    %36 = arith.addf %35, %34 : vector<8x1xf32>
    %37 = arith.divf %35, %36 : vector<8x1xf32>
    %cst_18 = arith.constant 0xFF800000 : f32
    %38 = vector.broadcast %cst_18 : f32 to vector<8x128xf32>
    %39 = arith.select %2, %31, %38 : vector<8x128xi1>, vector<8x128xf32>
    %cst_19 = arith.constant dense<0xFF800000> : vector<8xf32>
    %40 = vector.multi_reduction <maximumf>, %39, %cst_19 [1] : vector<8x128xf32> to vector<8xf32>
    %41 = vector.shape_cast %40 : vector<8xf32> to vector<8x1xf32>
    %42 = vector.broadcast %41 : vector<8x1xf32> to vector<8x128xf32>
    %43 = arith.subf %39, %42 : vector<8x128xf32>
    %44 = math.exp %43 : vector<8x128xf32>
    %cst_20 = arith.constant dense<0.000000e+00> : vector<8xf32>
    %45 = vector.multi_reduction <add>, %44, %cst_20 [1] : vector<8x128xf32> to vector<8xf32>
    %46 = vector.shape_cast %45 : vector<8xf32> to vector<8x1xf32>
    %cst_21 = arith.constant 1.000000e+00 : f32
    %47 = vector.broadcast %cst_21 : f32 to vector<8x1xf32>
    %48 = arith.divf %47, %46 : vector<8x1xf32>
    %49 = vector.broadcast %48 : vector<8x1xf32> to vector<8x128xf32>
    %50 = arith.mulf %44, %49 : vector<8x128xf32>
    %51 = vector.extract_strided_slice %50 {offsets = [0, 7], sizes = [8, 1], strides = [1, 1]} : vector<8x128xf32> to vector<8x1xf32>
    %52 = vector.broadcast %37 : vector<8x1xf32> to vector<8x128xf32>
    %53 = arith.mulf %50, %52 : vector<8x128xf32>
    %54 = arith.addf %5, %53 : vector<8x128xf32>
    %55 = arith.mulf %51, %51 : vector<8x1xf32>
    %56 = arith.subf %51, %55 : vector<8x1xf32>
    %cst_22 = arith.constant 2.000000e+00 : f32
    %57 = vector.broadcast %cst_22 : f32 to vector<8x1xf32>
    %58 = arith.mulf %56, %57 : vector<8x1xf32>
    %59 = arith.mulf %58, %37 : vector<8x1xf32>
    %60 = arith.addf %6, %59 : vector<8x1xf32>
    %cst_23 = arith.constant dense<0.000000e+00> : vector<8xf32>
    %61 = vector.multi_reduction <add>, %24, %cst_23 [1] : vector<8x32xf32> to vector<8xf32>
    %62 = vector.shape_cast %61 : vector<8xf32> to vector<8x1xf32>
    %63 = arith.addf %7, %62 : vector<8x1xf32>
    %c1 = arith.constant 1 : index
    %c0_24 = arith.constant 0 : index
    %c0_25 = arith.constant 0 : index
    %64 = vector.load %arg1[%c1, %c0_24, %c0_25] : memref<2x8x32xf32, #tpu.memory_space<vmem>>, vector<1x8x32xf32>
    %65 = vector.shape_cast %64 : vector<1x8x32xf32> to vector<8x32xf32>
    %c1_26 = arith.constant 1 : index
    %c0_27 = arith.constant 0 : index
    %c0_28 = arith.constant 0 : index
    %66 = vector.load %arg4[%c1_26, %c0_27, %c0_28] : memref<2x2x128xf32, #tpu.memory_space<vmem>>, vector<1x2x128xf32>
    %67 = vector.shape_cast %66 : vector<1x2x128xf32> to vector<2x128xf32>
    %68 = vector.extract_strided_slice %67 {offsets = [0, 0], sizes = [1, 32], strides = [1, 1]} : vector<2x128xf32> to vector<1x32xf32>
    %69 = vector.extract_strided_slice %67 {offsets = [1, 0], sizes = [1, 128], strides = [1, 1]} : vector<2x128xf32> to vector<1x128xf32>
    %70 = arith.truncf %65 : vector<8x32xf32> to vector<8x32xbf16>
    %c1_29 = arith.constant 1 : index
    %c0_30 = arith.constant 0 : index
    %c0_31 = arith.constant 0 : index
    %71 = vector.load %arg2[%c1_29, %c0_30, %c0_31] : memref<2x32x32xbf16, #tpu.memory_space<vmem>>, vector<1x32x32xbf16>
    %72 = vector.shape_cast %71 : vector<1x32x32xbf16> to vector<32x32xbf16>
    %cst_32 = arith.constant dense<0.000000e+00> : vector<8x32xf32>
    %73 = tpu.matmul %70, %72, %cst_32 {dimension_numbers = #tpu.dot_dimension_numbers<[1], [0], [0], [1], [0, 0, 1, 1], [], []>} : vector<8x32xbf16>, vector<32x32xbf16>, vector<8x32xf32> -> vector<8x32xf32>
    %74 = vector.broadcast %68 : vector<1x32xf32> to vector<8x32xf32>
    %75 = arith.addf %73, %74 : vector<8x32xf32>
    %76 = arith.negf %75 : vector<8x32xf32>
    %77 = math.exp %76 : vector<8x32xf32>
    %cst_33 = arith.constant 1.000000e+00 : f32
    %78 = vector.broadcast %cst_33 : f32 to vector<8x32xf32>
    %79 = arith.addf %78, %77 : vector<8x32xf32>
    %80 = arith.divf %78, %79 : vector<8x32xf32>
    %81 = arith.mulf %65, %80 : vector<8x32xf32>
    %82 = arith.truncf %81 : vector<8x32xf32> to vector<8x32xbf16>
    %c1_34 = arith.constant 1 : index
    %c0_35 = arith.constant 0 : index
    %c0_36 = arith.constant 0 : index
    %83 = vector.load %arg3[%c1_34, %c0_35, %c0_36] : memref<2x32x128xbf16, #tpu.memory_space<vmem>>, vector<1x32x128xbf16>
    %84 = vector.shape_cast %83 : vector<1x32x128xbf16> to vector<32x128xbf16>
    %cst_37 = arith.constant dense<0.000000e+00> : vector<8x128xf32>
    %85 = tpu.matmul %82, %84, %cst_37 {dimension_numbers = #tpu.dot_dimension_numbers<[1], [0], [0], [1], [0, 0, 1, 1], [], []>} : vector<8x32xbf16>, vector<32x128xbf16>, vector<8x128xf32> -> vector<8x128xf32>
    %86 = vector.broadcast %69 : vector<1x128xf32> to vector<8x128xf32>
    %87 = arith.addf %85, %86 : vector<8x128xf32>
    %88 = vector.extract_strided_slice %87 {offsets = [0, 8], sizes = [8, 1], strides = [1, 1]} : vector<8x128xf32> to vector<8x1xf32>
    %89 = arith.negf %88 : vector<8x1xf32>
    %90 = math.exp %89 : vector<8x1xf32>
    %cst_38 = arith.constant 1.000000e+00 : f32
    %91 = vector.broadcast %cst_38 : f32 to vector<8x1xf32>
    %92 = arith.addf %91, %90 : vector<8x1xf32>
    %93 = arith.divf %91, %92 : vector<8x1xf32>
    %cst_39 = arith.constant 0xFF800000 : f32
    %94 = vector.broadcast %cst_39 : f32 to vector<8x128xf32>
    %95 = arith.select %2, %87, %94 : vector<8x128xi1>, vector<8x128xf32>
    %cst_40 = arith.constant dense<0xFF800000> : vector<8xf32>
    %96 = vector.multi_reduction <maximumf>, %95, %cst_40 [1] : vector<8x128xf32> to vector<8xf32>
    %97 = vector.shape_cast %96 : vector<8xf32> to vector<8x1xf32>
    %98 = vector.broadcast %97 : vector<8x1xf32> to vector<8x128xf32>
    %99 = arith.subf %95, %98 : vector<8x128xf32>
    %100 = math.exp %99 : vector<8x128xf32>
    %cst_41 = arith.constant dense<0.000000e+00> : vector<8xf32>
    %101 = vector.multi_reduction <add>, %100, %cst_41 [1] : vector<8x128xf32> to vector<8xf32>
    %102 = vector.shape_cast %101 : vector<8xf32> to vector<8x1xf32>
    %cst_42 = arith.constant 1.000000e+00 : f32
    %103 = vector.broadcast %cst_42 : f32 to vector<8x1xf32>
    %104 = arith.divf %103, %102 : vector<8x1xf32>
    %105 = vector.broadcast %104 : vector<8x1xf32> to vector<8x128xf32>
    %106 = arith.mulf %100, %105 : vector<8x128xf32>
    %107 = vector.extract_strided_slice %106 {offsets = [0, 7], sizes = [8, 1], strides = [1, 1]} : vector<8x128xf32> to vector<8x1xf32>
    %108 = vector.broadcast %93 : vector<8x1xf32> to vector<8x128xf32>
    %109 = arith.mulf %106, %108 : vector<8x128xf32>
    %110 = arith.addf %54, %109 : vector<8x128xf32>
    %111 = arith.mulf %107, %107 : vector<8x1xf32>
    %112 = arith.subf %107, %111 : vector<8x1xf32>
    %cst_43 = arith.constant 2.000000e+00 : f32
    %113 = vector.broadcast %cst_43 : f32 to vector<8x1xf32>
    %114 = arith.mulf %112, %113 : vector<8x1xf32>
    %115 = arith.mulf %114, %93 : vector<8x1xf32>
    %116 = arith.addf %60, %115 : vector<8x1xf32>
    %cst_44 = arith.constant dense<0.000000e+00> : vector<8xf32>
    %117 = vector.multi_reduction <add>, %80, %cst_44 [1] : vector<8x32xf32> to vector<8xf32>
    %118 = vector.shape_cast %117 : vector<8xf32> to vector<8x1xf32>
    %119 = arith.addf %63, %118 : vector<8x1xf32>
    %c7_i32 = arith.constant 7 : i32
    %120 = vector.broadcast %c7_i32 : i32 to vector<8x128xi32>
    %121 = arith.cmpi slt, %0, %120 : vector<8x128xi32>
    %cst_45 = arith.constant 0xFF800000 : f32
    %122 = vector.broadcast %cst_45 : f32 to vector<8x128xf32>
    %123 = arith.select %121, %110, %122 : vector<8x128xi1>, vector<8x128xf32>
    %cst_46 = arith.constant dense<0xFF800000> : vector<8xf32>
    %124 = vector.multi_reduction <maximumf>, %123, %cst_46 [1] : vector<8x128xf32> to vector<8xf32>
    %125 = vector.shape_cast %124 : vector<8xf32> to vector<8x1xf32>
    %126 = vector.broadcast %125 : vector<8x1xf32> to vector<8x128xf32>
    %127 = arith.subf %123, %126 : vector<8x128xf32>
    %128 = math.exp %127 : vector<8x128xf32>
    %cst_47 = arith.constant dense<0.000000e+00> : vector<8xf32>
    %129 = vector.multi_reduction <add>, %128, %cst_47 [1] : vector<8x128xf32> to vector<8xf32>
    %130 = vector.shape_cast %129 : vector<8xf32> to vector<8x1xf32>
    %cst_48 = arith.constant 1.000000e+00 : f32
    %131 = vector.broadcast %cst_48 : f32 to vector<8x1xf32>
    %132 = arith.divf %131, %130 : vector<8x1xf32>
    %133 = vector.broadcast %132 : vector<8x1xf32> to vector<8x128xf32>
    %134 = arith.mulf %128, %133 : vector<8x128xf32>
    %135 = vector.extract_strided_slice %110 {offsets = [0, 7], sizes = [8, 1], strides = [1, 1]} : vector<8x128xf32> to vector<8x1xf32>
    %136 = arith.addf %135, %116 : vector<8x1xf32>
    %137 = arith.maximumf %125, %136 : vector<8x1xf32>
    %138 = tpu.reciprocal %137 {approx = true} : vector<8x1xf32> -> vector<8x1xf32>
    %139 = arith.mulf %136, %138 : vector<8x1xf32>
    %140 = math.log %130 : vector<8x1xf32>
    %141 = arith.addf %125, %140 : vector<8x1xf32>
    %142 = vector.broadcast %141 : vector<8x1xf32> to vector<8x128xf32>
    %143 = arith.subf %110, %142 : vector<8x128xf32>
    %c0_49 = arith.constant 0 : index
    %c0_50 = arith.constant 0 : index
    %144 = vector.load %arg5[%c0_49, %c0_50] : memref<8x1xi32, #tpu.memory_space<vmem>>, vector<8x1xi32>
    %145 = vector.broadcast %144 : vector<8x1xi32> to vector<8x128xi32>
    %146 = arith.cmpi eq, %0, %145 : vector<8x128xi32>
    %147 = arith.extui %146 : vector<8x128xi1> to vector<8x128xi32>
    %148 = arith.sitofp %147 : vector<8x128xi32> to vector<8x128xf32>
    %149 = arith.mulf %148, %143 : vector<8x128xf32>
    %cst_51 = arith.constant dense<0.000000e+00> : vector<8xf32>
    %150 = vector.multi_reduction <add>, %149, %cst_51 [1] : vector<8x128xf32> to vector<8xf32>
    %151 = vector.shape_cast %150 : vector<8xf32> to vector<8x1xf32>
    %cst_52 = arith.constant 0.000000e+00 : f32
    %152 = vector.broadcast %cst_52 : f32 to vector<8x1xf32>
    %153 = arith.subf %152, %151 : vector<8x1xf32>
    %c7_i32_53 = arith.constant 7 : i32
    %154 = vector.broadcast %c7_i32_53 : i32 to vector<8x128xi32>
    %155 = arith.cmpi eq, %0, %154 : vector<8x128xi32>
    %cst_54 = arith.constant 0.000000e+00 : f32
    %156 = vector.shape_cast %139 : vector<8x1xf32> to vector<8x1xf32>
    %157 = vector.broadcast %156 : vector<8x1xf32> to vector<8x128xf32>
    %158 = vector.broadcast %cst_54 : f32 to vector<8x128xf32>
    %159 = arith.select %155, %157, %158 : vector<8x128xi1>, vector<8x128xf32>
    %160 = arith.addf %134, %159 : vector<8x128xf32>
    %c8_i32_55 = arith.constant 8 : i32
    %161 = vector.broadcast %c8_i32_55 : i32 to vector<8x128xi32>
    %162 = arith.cmpi eq, %0, %161 : vector<8x128xi32>
    %cst_56 = arith.constant 0.000000e+00 : f32
    %163 = vector.shape_cast %153 : vector<8x1xf32> to vector<8x1xf32>
    %164 = vector.broadcast %163 : vector<8x1xf32> to vector<8x128xf32>
    %165 = vector.broadcast %cst_56 : f32 to vector<8x128xf32>
    %166 = arith.select %162, %164, %165 : vector<8x128xi1>, vector<8x128xf32>
    %167 = arith.addf %160, %166 : vector<8x128xf32>
    %c9_i32 = arith.constant 9 : i32
    %168 = vector.broadcast %c9_i32 : i32 to vector<8x128xi32>
    %169 = arith.cmpi eq, %0, %168 : vector<8x128xi32>
    %cst_57 = arith.constant 0.000000e+00 : f32
    %170 = vector.shape_cast %119 : vector<8x1xf32> to vector<8x1xf32>
    %171 = vector.broadcast %170 : vector<8x1xf32> to vector<8x128xf32>
    %172 = vector.broadcast %cst_57 : f32 to vector<8x128xf32>
    %173 = arith.select %169, %171, %172 : vector<8x128xi1>, vector<8x128xf32>
    %174 = arith.addf %167, %173 : vector<8x128xf32>
    %c0_58 = arith.constant 0 : index
    %c0_59 = arith.constant 0 : index
    %175 = vector.load %arg6[%c0_58, %c0_59] : memref<8x128xf32, #tpu.memory_space<vmem>>, vector<8x128xf32>
    tpu.vector_store %arg6[%c0_58, %c0_59], %174 {strides = array<i32>} : memref<8x128xf32, #tpu.memory_space<vmem>>, vector<8x128xf32>,
    return
  }
  func.func @transform_0(%arg0: i32) -> (i32, i32, i32) {
    %c0_i32 = arith.constant 0 : i32
    %c0_i32_0 = arith.constant 0 : i32
    %c0_i32_1 = arith.constant 0 : i32
    return %c0_i32, %arg0, %c0_i32_0 : i32, i32, i32
  }
  func.func @transform_1(%arg0: i32) -> (i32, i32, i32) {
    %c0_i32 = arith.constant 0 : i32
    %c0_i32_0 = arith.constant 0 : i32
    %c0_i32_1 = arith.constant 0 : i32
    %c0_i32_2 = arith.constant 0 : i32
    return %c0_i32, %c0_i32_0, %c0_i32_1 : i32, i32, i32
  }
  func.func @transform_2(%arg0: i32) -> (i32, i32, i32) {
    %c0_i32 = arith.constant 0 : i32
    %c0_i32_0 = arith.constant 0 : i32
    %c0_i32_1 = arith.constant 0 : i32
    %c0_i32_2 = arith.constant 0 : i32
    return %c0_i32, %c0_i32_0, %c0_i32_1 : i32, i32, i32
  }
  func.func @transform_3(%arg0: i32) -> (i32, i32, i32) {
    %c0_i32 = arith.constant 0 : i32
    %c0_i32_0 = arith.constant 0 : i32
    %c0_i32_1 = arith.constant 0 : i32
    %c0_i32_2 = arith.constant 0 : i32
    return %c0_i32, %c0_i32_0, %c0_i32_1 : i32, i32, i32
  }
  func.func @transform_4(%arg0: i32) -> (i32, i32) {
    %c0_i32 = arith.constant 0 : i32
    %c0_i32_0 = arith.constant 0 : i32
    return %arg0, %c0_i32 : i32, i32
  }
  func.func @transform_5(%arg0: i32) -> (i32, i32) {
    %c0_i32 = arith.constant 0 : i32
    %c0_i32_0 = arith.constant 0 : i32
    return %arg0, %c0_i32 : i32, i32
  }
}

</mosaic_0001>

<bundles_post_ra>
// kernel: html_forward.1
= control target key start
LH: loop header
LB: loop body
LE: loop exit
PB: predicated region body
PF: predicated region fallthrough
CT: control target
= control target key end

     0   :  { %10 = vsyncpa [#allocation3], 0  ;;  %s696_s0 = inlined_call_operand.vmem [shape: f32[2,8,32], index: 0, kind: input, shape index: {}]   ;;  %s697_s1 = inlined_call_operand.vmem [shape: bf16[2,32,32], index: 1, kind: input, shape index: {}]   ;;  %s698_s2 = inlined_call_operand.hbm [shape: bf16[2,32,128], index: 2, kind: input, shape index: {}]   ;;  %s699_s3 = inlined_call_operand.hbm [shape: f32[2,2,128], index: 3, kind: input, shape index: {}]   ;;  %s700_s4 = inlined_call_operand.vmem [shape: s32[8,1], index: 4, kind: input, shape index: {}]   ;;  %s701_s5 = inlined_call_operand.vmem [shape: f32[8,128], index: 5, kind: output, shape index: {}]  }
   0x1   :  { %s20_s20 = sshll.u32 %s698_s2, 4  ;;  %s21_s20 = int_to_ptr.hbm [resolvable:$true] %s20_s20 }
   0x2   :  { %11 = vsyncpa [#allocation5], 0  ;;  %s584_s21 = smov [#allocation2]   ;;  %s33_s25 = sshll.u32 %s699_s3, 4  ;;  %s34_s25 = int_to_ptr.hbm [resolvable:$true] %s33_s25 }
   0x3   :  { %s22_s22 = sshll.u32 %s584_s21, 4  ;;  %s585_s26 = smov 64   ;;  %s23_s22 = int_to_ptr.vmem [resolvable:$true] %s22_s22 }
   0x4   :  { %s586_s27 = smov 4   ;;  %s587_s28 = smov [#allocation4]  }
   0x5   :  { %28 = dma.hbm_to_vmem [thread:$0]  %s21_s20, 512, %s23_s22, [#allocation3], %s585_s26, %s585_s26, %s586_s27  }
   0x6   :  { %s35_s29 = sshll.u32 %s587_s28, 4  ;;  %s588_s30 = smov 32   ;;  %s36_s29 = int_to_ptr.vmem [resolvable:$true] %s35_s29 }
   0x7   :  { %s589_s6 = smov 2  }
   0x8   :  { %41 = dma.hbm_to_vmem [thread:$0]  %s34_s25, 64, %s36_s29, [#allocation5], %s588_s30, %s588_s30, %s589_s6  }
   0x9   :  { %580 = dma.done.wait [#allocation3], 512  }
   0xa   :  { %581 = vsyncadd [#allocation3], 4294966784 }
   0xb   :  { %582 = dma.done.wait [#allocation5], 64  }
   0xc   :  { %583 = vsyncadd [#allocation5], 4294967232  ;;  %v478_v0 = vld [vmem:[%s697_s1 + $0x8] sm:$0xff]  ;;  %v482_v1 = vld [vmem:[%s697_s1 + $0x18] sm:$0xff]  ;;  %vm77_vm0 = vcmask 261120   ;;  %v53_v52 = vlaneseq  ;;  %v590_v53 = vmov 8  }
   0xd   :  { %v477_v2 = vld [vmem:[%s697_s1] sm:$0xff]  ;;  %87 = vmatpush.bf16.msra.mxu0 %v478_v0  ;;  %242 = vmatpush.bf16.msra.mxu2 %v482_v1  ;;  %v481_v3 = vld [vmem:[%s697_s1 + $0x10] sm:$0xff]  ;;  %v649_v5 = vld [vmem:[%s696_s0 + $0x8] sm:$0xff] }
   0xe   :  { %v57_v4 = vld [vmem:[%s696_s0] sm:$0xff]  ;;  %v214_v7 = vpack.c.bf16 %v649_v5, %v649_v5  ;;  %v480_v9 = vld [vmem:[#allocation2 + $0x8] sm:$0xff]  ;;  %v484_v10 = vld [vmem:[#allocation2 + $0x18] sm:$0xff]  ;;  %496 = vset.pattern.permute.xlu2 %v590_v53  ;;  %v670_v54 = vand.u32 127, %v53_v52  ;;  %s591_s0 = smov 127  }
   0xf   :  { %v59_v6 = vpack.c.bf16 %v57_v4, %v57_v4  ;;  %v655_v8 = vld [vmem:[#allocation4] sm:$0x3]  ;;  %141 = vmatpush.bf16.msra.mxu1 %v480_v9  ;;  %297 = vmatpush.bf16.msra.mxu3 %v484_v10  ;;  %v658_v14 = vld [vmem:[#allocation4 + $0x2] sm:$0x3]  ;;  %v483_v18 = vld [vmem:[#allocation2 + $0x10] sm:$0xff] }
  0x10   :  { %v479_v11 = vld [vmem:[#allocation2] sm:$0xff]  ;;  %v64_v12 = vperm.slane %v655_v8, 0  ;;  %v220_v17 = vperm.slane %v658_v14, 0  ;;  %v119_v55 = vperm.slane %v655_v8, 1  ;;  %vm55_vm9 = vcmp.lt.s32.totalorder %v670_v54, 8 }
  0x11   :  { %88 = vmatpush.bf16.msra.mxu0 %v477_v2  ;;  %243 = vmatpush.bf16.msra.mxu2 %v481_v3  ;;  %v275_v61 = vperm.slane %v658_v14, 1 }
  0x13   :  { %142 = vmatpush.bf16.msra.mxu1 %v479_v11  ;;  %298 = vmatpush.bf16.msra.mxu3 %v483_v18 }
  0x14   :  { %439 = vmatmul.msk.bf16.vlgmr.msra.gmra.mxu0 %vm77_vm0, %v59_v6  ;;  %464 = vmatmul.msk.bf16.vlgmr.msra.gmra.mxu2 %vm77_vm0, %v214_v7 }
  0x91   :  { %v90_v13 = vpop.f32.mrf.mxu0 }
  0x92   :  { %v91_v15 = vadd.f32 %v90_v13, %v64_v12 }
  0x94   :  { %v440_v16 = vmul.f32 -1.442695, %v91_v15 }
  0x96   :  { %500 = vpow2.f32 %v440_v16 }
  0x97   :  { %v245_v19 = vpop.f32.mrf.mxu2 }
  0x98   :  { %v246_v20 = vadd.f32 %v245_v19, %v220_v17 }
  0x99   :  { %v92_v21 = vpop.f32.mrf.mxu0 }
  0x9a   :  { %v465_v22 = vmul.f32 -1.442695, %v246_v20 }
  0x9c   :  { %v501_v23 = vpop.eup %500  ;;  %502 = vpow2.f32 %v465_v22 }
  0x9d   :  { %v97_v24 = vadd.f32 1.0, %v501_v23 }
  0x9f   :  { %504 = vrcp.f32 %v97_v24  ;;  %v247_v25 = vpop.f32.mrf.mxu2  ;;  %v109_v31 = vand.u32 2147483648, %v97_v24  ;;  %v107_v33 = vand.u32 2147483647, %v97_v24  ;;  %vm103_vm2 = vweird.f32 %v97_v24 }
  0xa1   :  { %v110_v37 = vor.u32 1.1754944e-38, %v109_v31  ;;  %vm108_vm4 = vcmp.eq.f32.partialorder %v107_v33, 8.507059e+37 }
  0xa2   :  { %v503_v26 = vpop.eup %502 }
  0xa3   :  { %v252_v27 = vadd.f32 1.0, %v503_v26 }
  0xa5   :  { %v505_v28 = vpop.eup %504  ;;  %506 = vrcp.f32 %v252_v27  ;;  %v264_v41 = vand.u32 2147483648, %v252_v27  ;;  %v262_v44 = vand.u32 2147483647, %v252_v27  ;;  %vm258_vm6 = vweird.f32 %v252_v27 }
  0xa6   :  { %v99_v29 = vmul.f32 %v505_v28, %v97_v24  ;;  %vm104_vm1 = vweird.f32 %v505_v28 }
  0xa7   :  { %vm105_vm3 = vmor %vm103_vm2, %vm104_vm1  ;;  %v265_v47 = vor.u32 1.1754944e-38, %v264_v41  ;;  %vm263_vm8 = vcmp.eq.f32.partialorder %v262_v44, 8.507059e+37 }
  0xa8   :  { %v100_v30 = vsub.f32 1.0, %v99_v29 }
  0xaa   :  { %v101_v32 = vmul.f32 %v505_v28, %v100_v30 }
  0xab   :  { %v507_v34 = vpop.eup %506 }
  0xac   :  { %v254_v35 = vmul.f32 %v507_v34, %v252_v27  ;;  %v102_v36 = vadd.f32 %v505_v28, %v101_v32  ;;  %vm259_vm5 = vweird.f32 %v507_v34 }
  0xad   :  { %vm260_vm7 = vmor %vm258_vm6, %vm259_vm5 }
  0xae   :  { %v106_v38 = vsel %vm105_vm3, %v505_v28, %v102_v36  ;;  %v255_v39 = vsub.f32 1.0, %v254_v35 }
  0xaf   :  { %v661_v40 = vsel %vm108_vm4, %v110_v37, %v106_v38 }
  0xb0   :  { %v113_v42 = vmul.f32 %v661_v40, %v57_v4  ;;  %v256_v43 = vmul.f32 %v507_v34, %v255_v39 }
  0xb2   :  { %v114_v45 = vpack.c.bf16 %v113_v42, %v113_v42  ;;  %v257_v46 = vadd.f32 %v507_v34, %v256_v43 }
  0xb4   :  { %449 = vmatmul.msk.bf16.vlgmr.msra.gmra.mxu1 %vm77_vm0, %v114_v45  ;;  %v261_v48 = vsel %vm260_vm7, %v507_v34, %v257_v46 }
  0xb5   :  { %v665_v49 = vsel %vm263_vm8, %v265_v47, %v261_v48 }
  0xb6   :  { %v268_v50 = vmul.f32 %v649_v5, %v665_v49 }
  0xb8   :  { %v269_v51 = vpack.c.bf16 %v268_v50, %v268_v50 }
  0xba   :  { %474 = vmatmul.msk.bf16.vlgmr.msra.gmra.mxu3 %vm77_vm0, %v269_v51 }
 0x131   :  { %v144_v56 = vpop.f32.mrf.mxu1 }
 0x132   :  { %v145_v57 = vadd.f32 %v144_v56, %v119_v55 }
 0x134   :  { %v450_v58 = vmul.f32 -1.442695, %v145_v57  ;;  %v167_v59 = vsel %vm55_vm9, %v145_v57, -inf }
 0x135   :  { %168 = vmax.xlane.f32.xlu0 %v167_v59 }
 0x136   :  { %508 = vpow2.f32 %v450_v58 }
 0x139   :  { %v146_v60 = vpop.f32.mrf.mxu1 }
 0x13c   :  { %v509_v62 = vpop.eup %508 }
 0x13d   :  { %v151_v63 = vadd.f32 1.0, %v509_v62  ;;  %v300_v0 = vpop.f32.mrf.mxu3 }
 0x13e   :  { %v301_v1 = vadd.f32 %v300_v0, %v275_v61  ;;  %v592_v0 = vmov 0.0  }
 0x13f   :  { %510 = vrcp.f32 %v151_v63  ;;  %v163_v10 = vand.u32 2147483648, %v151_v63  ;;  %v161_v12 = vand.u32 2147483647, %v151_v63  ;;  %vm157_vm11 = vweird.f32 %v151_v63 }
 0x140   :  { %v475_v2 = vmul.f32 -1.442695, %v301_v1  ;;  %v323_v3 = vsel %vm55_vm9, %v301_v1, -inf  ;;  %v56_v1 = vsel %vm55_vm9, 1.0, %v592_v0 }
 0x141   :  { %324 = vmax.xlane.f32.xlu0 %v323_v3  ;;  %v164_v14 = vor.u32 1.1754944e-38, %v163_v10  ;;  %vm162_vm13 = vcmp.eq.f32.partialorder %v161_v12, 8.507059e+37 }
 0x142   :  { %512 = vpow2.f32 %v475_v2 }
 0x145   :  { %v511_v4 = vpop.eup %510  ;;  %v302_v5 = vpop.f32.mrf.mxu3 }
 0x146   :  { %v153_v6 = vmul.f32 %v511_v4, %v151_v63  ;;  %vm158_vm10 = vweird.f32 %v511_v4 }
 0x147   :  { %vm159_vm12 = vmor %vm157_vm11, %vm158_vm10 }
 0x148   :  { %v513_v7 = vpop.eup %512  ;;  %v154_v8 = vsub.f32 1.0, %v153_v6 }
 0x149   :  { %v307_v9 = vadd.f32 1.0, %v513_v7 }
 0x14a   :  { %v155_v11 = vmul.f32 %v511_v4, %v154_v8 }
 0x14b   :  { %514 = vrcp.f32 %v307_v9  ;;  %v319_v20 = vand.u32 2147483648, %v307_v9  ;;  %v317_v22 = vand.u32 2147483647, %v307_v9  ;;  %vm313_vm15 = vweird.f32 %v307_v9 }
 0x14c   :  { %v156_v13 = vadd.f32 %v511_v4, %v155_v11 }
 0x14d   :  { %v320_v24 = vor.u32 1.1754944e-38, %v319_v20  ;;  %vm318_vm2 = vcmp.eq.f32.partialorder %v317_v22, 8.507059e+37  ;;  %v594_v20 = vmov 7  }
 0x14e   :  { %v160_v15 = vsel %vm159_vm12, %v511_v4, %v156_v13  ;;  %vm366_vm12 = vcmp.lt.s32.totalorder %v670_v54, 7  ;;  %499 = vset.pattern.permute.xlu0 %v594_v20 }
 0x14f   :  { %v165_v16 = vsel %vm162_vm13, %v164_v14, %v160_v15 }
 0x150   :  { %193 = vperm.xlu2 %496, %v165_v16  }
 0x151   :  { %v515_v17 = vpop.eup %514 }
 0x152   :  { %v309_v18 = vmul.f32 %v515_v17, %v307_v9  ;;  %vm314_vm14 = vweird.f32 %v515_v17 }
 0x153   :  { %vm315_vm1 = vmor %vm313_vm15, %vm314_vm14 }
 0x154   :  { %v310_v19 = vsub.f32 1.0, %v309_v18  ;;  %v593_v18 = vmov 0  }
 0x156   :  { %v311_v21 = vmul.f32 %v515_v17, %v310_v19  ;;  %v399_v19 = vld [vmem:[%s700_s4] sm:$0xff] }
 0x158   :  { %v312_v23 = vadd.f32 %v515_v17, %v311_v21 }
 0x15a   :  { %v316_v25 = vsel %vm315_vm1, %v515_v17, %v312_v23 }
 0x15b   :  { %v321_v26 = vsel %vm318_vm2, %v320_v24, %v316_v25  ;;  %vm418_vm2 = vcmp.eq.s32.totalorder %v670_v54, 8 }
 0x15c   :  { %349 = vperm.xlu2 %496, %v321_v26  }
 0x164   :  { %357 = vrot.lane.b32.xlu2 %v321_v26, %s591_s0 }
 0x165   :  { %497 = vset.pattern.permute.xlu2 %v593_v18 }
 0x16c   :  { %401 = vperm.xlu2 %497, %v399_v19  }
 0x174   :  { %498 = vset.pattern.permute.xlu2 %v594_v20 }
 0x1a8   :  { %v169_v27 = vpop.xlane.xlu0 %168 }
 0x1a9   :  { %v170_v28 = vsub.f32 %v167_v59, %v169_v27 }
 0x1aa   :  { %v194_v48 = vpop.permute.xlu2 %193 }
 0x1ab   :  { %v171_v29 = vmul.f32 1.442695, %v170_v28 }
 0x1ad   :  { %516 = vpow2.f32 %v171_v29  ;;  %v362_v29 = vsel %vm77_vm0, %v665_v49, 0.0 }
 0x1b3   :  { %v517_v30 = vpop.eup %516 }
 0x1b4   :  { %173 = vadd.xlane.f32.xlu1 %v517_v30  ;;  %v325_v31 = vpop.xlane.xlu0 %324 }
 0x1b5   :  { %v326_v32 = vsub.f32 %v323_v3, %v325_v31 }
 0x1b6   :  { %v350_v59 = vpop.permute.xlu2 %349 }
 0x1b7   :  { %v327_v33 = vmul.f32 1.442695, %v326_v32 }
 0x1b9   :  { %518 = vpow2.f32 %v327_v33 }
 0x1be   :  { %v358_v14 = vpop.permute.xlu2 %357 }
 0x1bf   :  { %v519_v34 = vpop.eup %518 }
 0x1c0   :  { %329 = vadd.xlane.f32.xlu1 %v519_v34 }
 0x1c6   :  { %v402_v32 = vpop.permute.xlu2 %401 }
 0x1c7   :  { %vm403_vm9 = vcmp.eq.s32.totalorder %v670_v54, %v402_v32 }
 0x1d9   :  { %201 = vrot.lane.b32.xlu1 %v165_v16, %s591_s0 }
 0x227   :  { %v174_v35 = vpop.xlane.xlu1 %173 }
 0x228   :  { %520 = vrcp.f32 %v174_v35  ;;  %v186_v43 = vand.u32 2147483648, %v174_v35  ;;  %vm180_vm4 = vweird.f32 %v174_v35  ;;  %v184_v44 = vand.u32 2147483647, %v174_v35 }
 0x22a   :  { %v187_v46 = vor.u32 1.1754944e-38, %v186_v43  ;;  %vm185_vm6 = vcmp.eq.f32.partialorder %v184_v44, 8.507059e+37 }
 0x22e   :  { %v521_v36 = vpop.eup %520 }
 0x22f   :  { %v176_v37 = vmul.f32 %v521_v36, %v174_v35  ;;  %vm181_vm3 = vweird.f32 %v521_v36  ;;  %v476_v35 = vsel %vm403_vm9, 1.0, %v592_v0 }
 0x230   :  { %vm182_vm5 = vmor %vm180_vm4, %vm181_vm3  ;;  %vm421_vm3 = vcmp.eq.s32.totalorder %v670_v54, 9 }
 0x231   :  { %v177_v38 = vsub.f32 1.0, %v176_v37 }
 0x233   :  { %v178_v39 = vmul.f32 %v521_v36, %v177_v38  ;;  %v330_v41 = vpop.xlane.xlu1 %329  ;;  %v206_v38 = vsel %vm77_vm0, %v661_v40, 0.0  ;;  %vm410_vm0 = vcmp.eq.s32.totalorder %v670_v54, 7 }
 0x234   :  { %522 = vrcp.f32 %v330_v41  ;;  %v342_v53 = vand.u32 2147483648, %v330_v41  ;;  %v340_v57 = vand.u32 2147483647, %v330_v41  ;;  %vm336_vm8 = vweird.f32 %v330_v41 }
 0x235   :  { %v179_v42 = vadd.f32 %v521_v36, %v178_v39 }
 0x236   :  { %v343_v60 = vor.u32 1.1754944e-38, %v342_v53  ;;  %vm341_vm11 = vcmp.eq.f32.partialorder %v340_v57, 8.507059e+37 }
 0x237   :  { %v183_v45 = vsel %vm182_vm5, %v521_v36, %v179_v42 }
 0x238   :  { %v188_v51 = vsel %vm185_vm6, %v187_v46, %v183_v45 }
 0x239   :  { %v190_v55 = vmul.f32 %v517_v30, %v188_v51 }
 0x23a   :  { %v523_v47 = vpop.eup %522 }
 0x23b   :  { %v332_v50 = vmul.f32 %v523_v47, %v330_v41  ;;  %vm337_vm7 = vweird.f32 %v523_v47  ;;  %v198_v61 = vmul.f32 %v190_v55, %v190_v55  ;;  %v196_v63 = vmul.f32 %v194_v48, %v190_v55 }
 0x23c   :  { %vm338_vm10 = vmor %vm336_vm8, %vm337_vm7 }
 0x23d   :  { %v333_v52 = vsub.f32 1.0, %v332_v50  ;;  %v199_v4 = vsub.f32 %v190_v55, %v198_v61  ;;  %v197_v6 = vadd.f32 %v196_v63, %v56_v1 }
 0x23f   :  { %v334_v56 = vmul.f32 %v523_v47, %v333_v52  ;;  %v200_v10 = vmul.f32 2.0, %v199_v4 }
 0x241   :  { %v335_v58 = vadd.f32 %v523_v47, %v334_v56 }
 0x243   :  { %v339_v62 = vsel %vm338_vm10, %v523_v47, %v335_v58 }
 0x244   :  { %v344_v2 = vsel %vm341_vm11, %v343_v60, %v339_v62 }
 0x245   :  { %v346_v3 = vmul.f32 %v519_v34, %v344_v2 }
 0x247   :  { %v354_v5 = vmul.f32 %v346_v3, %v346_v3  ;;  %v352_v7 = vmul.f32 %v350_v59, %v346_v3 }
 0x249   :  { %v355_v8 = vsub.f32 %v346_v3, %v354_v5  ;;  %v353_v9 = vadd.f32 %v352_v7, %v197_v6 }
 0x24b   :  { %v356_v11 = vmul.f32 2.0, %v355_v8  ;;  %v202_v12 = vpop.permute.xlu1 %201  ;;  %v367_v13 = vsel %vm366_vm12, %v353_v9, -inf }
 0x24c   :  { %v204_v15 = vmul.f32 %v202_v12, %v200_v10  ;;  %368 = vmax.xlane.f32.xlu0 %v367_v13 }
 0x24d   :  { %v360_v16 = vmul.f32 %v358_v14, %v356_v11 }
 0x24f   :  { %v361_v17 = vadd.f32 %v360_v16, %v204_v15 }
 0x251   :  { %v391_v21 = vadd.f32 %v361_v17, %v353_v9 }
 0x2bf   :  { %v369_v22 = vpop.xlane.xlu0 %368 }
 0x2c0   :  { %v370_v23 = vsub.f32 %v367_v13, %v369_v22  ;;  %v392_v24 = vmax.f32 %v369_v22, %v391_v21 }
 0x2c2   :  { %v371_v25 = vmul.f32 1.442695, %v370_v23  ;;  %524 = vrcp.f32 %v392_v24 }
 0x2c4   :  { %526 = vpow2.f32 %v371_v25 }
 0x2c8   :  { %v525_v26 = vpop.eup %524 }
 0x2c9   :  { %v394_v27 = vmul.f32 %v525_v26, %v391_v21 }
 0x2ca   :  { %v527_v28 = vpop.eup %526 }
 0x2cb   :  { %373 = vadd.xlane.f32.xlu0 %v527_v28  ;;  %413 = vperm.xlu2 %498, %v394_v27  }
 0x2f4   :  { %363 = vadd.xlane.f32.xlu2 %v362_v29 }
 0x325   :  { %v414_v48 = vpop.permute.xlu2 %413 }
 0x326   :  { %v416_v53 = vsel %vm410_vm0, %v414_v48, 0.0 }
 0x33e   :  { %v374_v30 = vpop.xlane.xlu0 %373 }
 0x33f   :  { %528 = vlog2.f32 %v374_v30  ;;  %v386_v44 = vand.u32 2147483648, %v374_v30  ;;  %vm380_vm14 = vweird.f32 %v374_v30  ;;  %v384_v45 = vand.u32 2147483647, %v374_v30 }
 0x340   :  { %530 = vrcp.f32 %v374_v30 }
 0x341   :  { %v387_v47 = vor.u32 1.1754944e-38, %v386_v44  ;;  %vm385_vm1 = vcmp.eq.f32.partialorder %v384_v45, 8.507059e+37 }
 0x345   :  { %v529_v31 = vpop.eup %528 }
 0x346   :  { %v396_v33 = vmul.f32 0.6931472, %v529_v31  ;;  %v531_v39 = vpop.eup %530 }
 0x347   :  { %v376_v49 = vmul.f32 %v531_v39, %v374_v30  ;;  %vm381_vm13 = vweird.f32 %v531_v39 }
 0x348   :  { %v397_v34 = vadd.f32 %v396_v33, %v369_v22  ;;  %vm382_vm15 = vmor %vm380_vm14, %vm381_vm13 }
 0x349   :  { %v377_v41 = vsub.f32 1.0, %v376_v49 }
 0x34a   :  { %v398_v36 = vsub.f32 %v353_v9, %v397_v34 }
 0x34b   :  { %v378_v42 = vmul.f32 %v531_v39, %v377_v41 }
 0x34c   :  { %v406_v37 = vmul.f32 %v476_v35, %v398_v36 }
 0x34d   :  { %v379_v43 = vadd.f32 %v531_v39, %v378_v42 }
 0x34e   :  { %407 = vadd.xlane.f32.xlu0 %v406_v37 }
 0x34f   :  { %v383_v46 = vsel %vm382_vm15, %v531_v39, %v379_v43 }
 0x350   :  { %v388_v51 = vsel %vm385_vm1, %v387_v47, %v383_v46 }
 0x351   :  { %v390_v40 = vmul.f32 %v527_v28, %v388_v51 }
 0x353   :  { %v417_v57 = vadd.f32 %v416_v53, %v390_v40 }
 0x356   :  { %207 = vadd.xlane.f32.xlu0 %v206_v38 }
 0x367   :  { %v364_v56 = vpop.xlane.xlu2 %363 }
 0x3c1   :  { %v408_v50 = vpop.xlane.xlu0 %407 }
 0x3c2   :  { %v409_v52 = vsub.f32 0.0, %v408_v50 }
 0x3c4   :  { %v419_v55 = vsel %vm418_vm2, %v409_v52, 0.0 }
 0x3c5   :  { %v420_v60 = vadd.f32 %v419_v55, %v417_v57 }
 0x3c9   :  { %v208_v58 = vpop.xlane.xlu0 %207 }
 0x3ca   :  { %v365_v59 = vadd.f32 %v364_v56, %v208_v58 }
 0x3cc   :  { %v422_v61 = vsel %vm421_vm3, %v365_v59, 0.0 }
 0x3cd   :  { %v423_v62 = vadd.f32 %v422_v61, %v420_v60 }
 0x3cf   :  { %424 = vst [vmem:[%s701_s5] sm:$0xff] %v423_v62 }
 0x3d0   :  { %429 = vsyncpa [#allocation3], 1 }
 0x3d1   :  { %430 = vsyncpa [#allocation5], 1 }

</bundles_post_ra>
